<compile_context>
chip_gen: v6e
topology: v6e:2x2x1
jax: 0.10.0
libtpu: 0.0.40
codegen_flags: <defaults>
</compile_context>

<pallas_src>
import jax
import jax.numpy as jnp
from jax import lax
from jax.experimental import pallas as pl
from jax.experimental.pallas import tpu as pltpu

NEG_SLOPE = 0.2
EPS = 1e-12


# ----------------------------- plain-JAX glue -------------------------------
def _l2_normalize(v, eps=EPS):
    return v / jnp.maximum(jnp.linalg.norm(v), eps)


def spectral_normalize(w_oihw, u):
    """PyTorch nn.utils.spectral_norm forward (training mode, 1 power iteration)."""
    # TODO(synk): PyTorch also updates the power-iteration buffer `u` in place;
    #             the forward here is stateless.
    w_mat = w_oihw.reshape(w_oihw.shape[0], -1)        # (Cout, Cin*kh*kw)
    v = _l2_normalize(w_mat.T @ u)
    u_new = _l2_normalize(w_mat @ v)
    sigma = u_new @ (w_mat @ v)
    return w_oihw / sigma


def _leaky(x):
    return jnp.where(x > 0, x, NEG_SLOPE * x)


def _toeplitz(w_oihw, wp_cols, wout, stride, col_off):
    """Banded per-ki matmul weight for a conv read from a flattened padded row
    buffer:  out[ki, wp*Cin+ci, wo*Cout+co] = w[co, ci, ki, kj]
    where wp == wo*stride + kj + col_off (and 0 elsewhere)."""
    cout, cin, kh, kw = w_oihw.shape
    w = jnp.transpose(w_oihw, (2, 3, 1, 0))                       # (kh,kw,Cin,Cout)
    wp = jnp.arange(wp_cols)[None, :, None]
    wo = jnp.arange(wout)[None, None, :]
    kj = jnp.arange(kw)[:, None, None]
    sel = (wp == wo * stride + kj + col_off).astype(w.dtype)      # (kw,Wp,Wout)
    toe = jnp.einsum('ajio,jpq->apiqo', w, sel)                   # (kh,Wp,Cin,Wout,Cout)
    return toe.reshape(kh, wp_cols * cin, wout * cout)


def _vmem_limit_bytes():
    try:
        cap = int(getattr(pltpu.get_tpu_info(), "vmem_capacity_bytes",
                          128 * 1024 * 1024))
    except Exception:
        cap = 128 * 1024 * 1024
    # ~96-100 MiB on 128-MiB chips (v5e/v6e); ~48 MiB on v7x's 64 MiB per core.
    return min(100 * 1024 * 1024, (cap * 3) // 4)


# ------------------------------ Pallas kernel -------------------------------
def _make_kernel(NB, H, W, Cin, Cout, Hout, Wout, stride, has_sc_conv):
    Hp, Wp = H + 2, W + 2
    Hop, Wop = Hout + 2, Wout + 2
    MB = NB * Hout            # matmul M (rows) per grid step
    WCo = Wout * Cout         # lane-dense output width

    def _rows(ref, ki):
        # W-contiguous (NB, Hout, cols) row slab starting at padded row `ki`.
        # TODO(synk): stride>1 uses a strided sublane read; it is implemented but
        #             not exercised by the tests below — validate before relying on it.
        if stride == 1:
            return ref[:, pl.ds(ki, Hout), :]
        return ref[:, pl.ds(ki, Hout, stride=stride), :]

    def kernel(x_ref, w1_ref, b1_ref, w2_ref, b2_ref, ws_ref, bs_ref,
               out_ref, xpad_ref, hpad_ref):
        # ---- zero ONLY the thin halo border of the bf16 padded scratches.
        #      Interior is fully rewritten every step; the border zeroing is redone
        #      each step (8 tiny stores) so correctness never depends on which
        #      TensorCore ran step 0 under "parallel" grid semantics.
        xpad_ref[:, 0:1, :] = jnp.zeros((NB, 1, Wp * Cin), jnp.bfloat16)
        xpad_ref[:, H + 1:H + 2, :] = jnp.zeros((NB, 1, Wp * Cin), jnp.bfloat16)
        xpad_ref[:, :, 0:Cin] = jnp.zeros((NB, Hp, Cin), jnp.bfloat16)
        xpad_ref[:, :, (W + 1) * Cin:Wp * Cin] = jnp.zeros((NB, Hp, Cin), jnp.bfloat16)
        hpad_ref[:, 0:1, :] = jnp.zeros((NB, 1, Wop * Cout), jnp.bfloat16)
        hpad_ref[:, Hout + 1:Hout + 2, :] = jnp.zeros((NB, 1, Wop * Cout), jnp.bfloat16)
        hpad_ref[:, :, 0:Cout] = jnp.zeros((NB, Hop, Cout), jnp.bfloat16)
        hpad_ref[:, :, (Wout + 1) * Cout:Wop * Cout] = jnp.zeros((NB, Hop, Cout), jnp.bfloat16)

        # conv1 input interior (cast to bf16 once); halo border stays zero
        xpad_ref[:, 1:1 + H, Cin:(W + 1) * Cin] = x_ref[...].astype(jnp.bfloat16)

        # ---- conv1: 3x3 / stride / pad=1 as 3 per-ki matmuls against banded
        #      weights: (MB, Wp*Cin) x (Wp*Cin, Wout*Cout), f32 accumulation.
        acc1 = jnp.zeros((MB, WCo), jnp.float32)
        centre = None
        for ki in range(3):
            lhs = _rows(xpad_ref, ki).reshape(MB, Wp * Cin)      # leading-dim fold only
            if ki == 1:
                centre = lhs                                     # reused by 1x1 shortcut
            acc1 = acc1 + jnp.dot(lhs, w1_ref[ki], preferred_element_type=jnp.float32)
        h1 = _leaky(acc1 + b1_ref[...])                          # f32 epilogue

        # ---- conv2: 3x3 / stride 1 / pad=1 on h1, same banded-weight trick
        hpad_ref[:, 1:1 + Hout, Cout:(Wout + 1) * Cout] = (
            h1.reshape(NB, Hout, WCo).astype(jnp.bfloat16))
        acc2 = jnp.zeros((MB, WCo), jnp.float32)
        for ki in range(3):
            lhs2 = hpad_ref[:, ki:ki + Hout, :].reshape(MB, Wop * Cout)
            acc2 = acc2 + jnp.dot(lhs2, w2_ref[ki], preferred_element_type=jnp.float32)
        acc2 = acc2 + b2_ref[...]

        # ---- shortcut
        if has_sc_conv:
            # 1x1 strided spectral-norm conv: reuses conv1's centre (ki=1) row slab
            sc = jnp.dot(centre, ws_ref[...], preferred_element_type=jnp.float32)
            sc = sc + bs_ref[...]
        else:
            # identity (stride==1, Cin==Cout): exact f32 add, layout already matches
            sc = x_ref[...].reshape(MB, WCo)

        out_ref[...] = _leaky(acc2 + sc)      # lane-dense (MB, Wout*Cout) f32 store

    return kernel


def sn_residual_block_pallas(x_nchw, params, stride=1, batch_block=None):
    N, Cin, H, W = x_nchw.shape
    Cout = params["w1"].shape[0]
    Hout = (H - 1) // stride + 1
    Wout = (W - 1) // stride + 1
    has_sc = params["ws"] is not None
    if not has_sc:
        assert stride == 1 and Cin == Cout, (
            "identity shortcut requires stride==1 and in_channels==out_channels")

    # batch tiling: default to >=2 grid steps (pipelining + v7x megacore)
    if batch_block is None:
        NB = N // 2 if (N >= 2 and N % 2 == 0) else 1
    else:
        NB = batch_block
    assert N % NB == 0, "batch_block must divide N"
    if NB < N and (NB * Hout) % 8 != 0:
        NB = N            # keep the output block (8,128)-tileable

    # --- spectral normalization + banded weight layout (parameter glue, plain JAX) ---
    w1 = spectral_normalize(params["w1"], params["u1"])               # (Cout,Cin,3,3)
    w2 = spectral_normalize(params["w2"], params["u2"])               # (Cout,Cout,3,3)
    w1_k = _toeplitz(w1, W + 2, Wout, stride, 0).astype(jnp.bfloat16)     # (3, Wp*Cin, Wout*Cout)
    w2_k = _toeplitz(w2, Wout + 2, Wout, 1, 0).astype(jnp.bfloat16)       # (3, Wop*Cout, Wout*Cout)
    b1_k = jnp.tile(params["b1"], (Wout,)).reshape(1, Wout * Cout).astype(jnp.float32)
    b2_k = jnp.tile(params["b2"], (Wout,)).reshape(1, Wout * Cout).astype(jnp.float32)
    if has_sc:
        ws = spectral_normalize(params["ws"], params["us"])           # (Cout,Cin,1,1)
        ws_k = _toeplitz(ws, W + 2, Wout, stride, 1)[0].astype(jnp.bfloat16)
        bs_k = jnp.tile(params["bs"], (Wout,)).reshape(1, Wout * Cout).astype(jnp.float32)
    else:
        ws_k = jnp.zeros(((W + 2) * Cin, Wout * Cout), jnp.bfloat16)  # unused
        bs_k = jnp.zeros((1, Wout * Cout), jnp.float32)               # unused

    # boundary layout change only: NCHW -> flattened N,H,(W*C); f32 so the identity
    # shortcut residual add stays exact.  No wrapper-side spatial padding.
    x_flat = jnp.transpose(x_nchw, (0, 2, 3, 1)).reshape(N, H, W * Cin).astype(jnp.float32)

    kernel = _make_kernel(NB, H, W, Cin, Cout, Hout, Wout, stride, has_sc)

    out_flat = pl.pallas_call(
        kernel,
        out_shape=jax.ShapeDtypeStruct((N * Hout, Wout * Cout), jnp.float32),
        grid_spec=pltpu.PrefetchScalarGridSpec(
            num_scalar_prefetch=0,
            grid=(N // NB,),
            in_specs=[
                pl.BlockSpec((NB, H, W * Cin), lambda b: (b, 0, 0)),
                pl.BlockSpec((3, (W + 2) * Cin, Wout * Cout), lambda b: (0, 0, 0)),
                pl.BlockSpec((1, Wout * Cout), lambda b: (0, 0)),
                pl.BlockSpec((3, (Wout + 2) * Cout, Wout * Cout), lambda b: (0, 0, 0)),
                pl.BlockSpec((1, Wout * Cout), lambda b: (0, 0)),
                pl.BlockSpec(((W + 2) * Cin, Wout * Cout), lambda b: (0, 0)),
                pl.BlockSpec((1, Wout * Cout), lambda b: (0, 0)),
            ],
            out_specs=pl.BlockSpec((NB * Hout, Wout * Cout), lambda b: (b, 0)),
            scratch_shapes=[
                pltpu.VMEM((NB, H + 2, (W + 2) * Cin), jnp.bfloat16),         # padded conv1 input
                pltpu.VMEM((NB, Hout + 2, (Wout + 2) * Cout), jnp.bfloat16),  # padded conv1 output
            ],
        ),
        compiler_params=pltpu.CompilerParams(
            dimension_semantics=("parallel",),
            vmem_limit_bytes=_vmem_limit_bytes(),
        ),
    )(x_flat, w1_k, b1_k, w2_k, b2_k, ws_k, bs_k)

    out_nhwc = out_flat.reshape(N, Hout, Wout, Cout)
    return jnp.transpose(out_nhwc, (0, 3, 1, 2))                  # back to NCHW (module contract)


# ------------------------- pure-JAX reference (NCHW) -------------------------
def sn_residual_block_ref(x_nchw, params, stride=1):
    dn = ("NCHW", "OIHW", "NCHW")
    prec = lax.Precision.HIGHEST
    w1 = spectral_normalize(params["w1"], params["u1"])
    w2 = spectral_normalize(params["w2"], params["u2"])
    out = lax.conv_general_dilated(x_nchw, w1, (stride, stride), ((1, 1), (1, 1)),
                                   dimension_numbers=dn, precision=prec)
    out = out + params["b1"].reshape(1, -1, 1, 1)
    out = _leaky(out)
    out = lax.conv_general_dilated(out, w2, (1, 1), ((1, 1), (1, 1)),
                                   dimension_numbers=dn, precision=prec)
    out = out + params["b2"].reshape(1, -1, 1, 1)
    if params["ws"] is not None:
        ws = spectral_normalize(params["ws"], params["us"])
        sc = lax.conv_general_dilated(x_nchw, ws, (stride, stride), ((0, 0), (0, 0)),
                                      dimension_numbers=dn, precision=prec)
        sc = sc + params["bs"].reshape(1, -1, 1, 1)
    else:
        sc = x_nchw
    return _leaky(out + sc)


# ------------------------------ deterministic init ---------------------------
def init_params(key, in_channels, out_channels, stride):
    ks = jax.random.split(key, 9)
    p = {
        "w1": 0.1 * jax.random.normal(ks[0], (out_channels, in_channels, 3, 3), jnp.float32),
        "b1": 0.1 * jax.random.normal(ks[1], (out_channels,), jnp.float32),
        "u1": _l2_normalize(jax.random.normal(ks[2], (out_channels,), jnp.float32)),
        "w2": 0.1 * jax.random.normal(ks[3], (out_channels, out_channels, 3, 3), jnp.float32),
        "b2": 0.1 * jax.random.normal(ks[4], (out_channels,), jnp.float32),
        "u2": _l2_normalize(jax.random.normal(ks[5], (out_channels,), jnp.float32)),
    }
    if stride != 1 or in_channels != out_channels:
        p["ws"] = 0.1 * jax.random.normal(ks[6], (out_channels, in_channels, 1, 1), jnp.float32)
        p["bs"] = 0.1 * jax.random.normal(ks[7], (out_channels,), jnp.float32)
        p["us"] = _l2_normalize(jax.random.normal(ks[8], (out_channels,), jnp.float32))
    else:
        p["ws"] = p["bs"] = p["us"] = None
    return p


if __name__ == "__main__":
    key = jax.random.PRNGKey(0)
    k_x, k_p, k_x2, k_p2 = jax.random.split(key, 4)

    # case 1: in != out channels -> 1x1 spectral-norm shortcut conv
    N, Cin, H, W = 2, 4, 16, 16
    Cout, stride = 8, 1
    x = jax.random.normal(k_x, (N, Cin, H, W), jnp.float32)
    params = init_params(k_p, Cin, Cout, stride)
    out = jax.block_until_ready(sn_residual_block_pallas(x, params, stride))
    ref = sn_residual_block_ref(x, params, stride)
    assert out.shape == (N, Cout, (H - 1) // stride + 1, (W - 1) // stride + 1)
    err1 = float(jnp.max(jnp.abs(out - ref)))
    # bf16 MXU operands vs f32 HIGHEST-precision reference -> loosened tolerance
    assert jnp.allclose(out, ref, atol=2e-2, rtol=2e-2), f"max abs err = {err1}"

    # case 2: in == out channels, stride=1 -> identity shortcut (exact f32 residual add)
    x2 = jax.random.normal(k_x2, (N, 8, H, W), jnp.float32)
    params2 = init_params(k_p2, 8, 8, 1)
    out2 = jax.block_until_ready(sn_residual_block_pallas(x2, params2, 1))
    ref2 = sn_residual_block_ref(x2, params2, 1)
    err2 = float(jnp.max(jnp.abs(out2 - ref2)))
    assert jnp.allclose(out2, ref2, atol=2e-2, rtol=2e-2), f"max abs err = {err2}"

    print("KERNEL_OK")
</pallas_src>

<mosaic_0001>
module attributes {stable_mosaic.version = 11 : i64} {
  func.func @kernel(%arg0: i32, %arg1: memref<1x16x64xf32, #tpu.memory_space<vmem>>, %arg2: memref<3x72x128xbf16, #tpu.memory_space<vmem>>, %arg3: memref<1x128xf32, #tpu.memory_space<vmem>>, %arg4: memref<3x144x128xbf16, #tpu.memory_space<vmem>>, %arg5: memref<1x128xf32, #tpu.memory_space<vmem>>, %arg6: memref<72x128xbf16, #tpu.memory_space<vmem>>, %arg7: memref<1x128xf32, #tpu.memory_space<vmem>>, %arg8: memref<16x128xf32, #tpu.memory_space<vmem>>, %arg9: memref<1x18x72xbf16, #tpu.memory_space<vmem>>, %arg10: memref<1x18x144xbf16, #tpu.memory_space<vmem>>) attributes {dimension_semantics = [#tpu.dimension_semantics<parallel>], iteration_bounds = array<i64: 2>, scalar_prefetch = 0 : i64, scratch_operands = 2 : i64, tpu.core_type = #tpu.core_type<tc>, window_params = [{transform_indices = @transform_0, window_bounds = array<i64: 1, 16, 64>}, {pipeline_mode = #tpu.pipeline_mode<synchronous>, transform_indices = @transform_1, window_bounds = array<i64: 3, 72, 128>}, {pipeline_mode = #tpu.pipeline_mode<synchronous>, transform_indices = @transform_2, window_bounds = array<i64: 1, 128>}, {pipeline_mode = #tpu.pipeline_mode<synchronous>, transform_indices = @transform_3, window_bounds = array<i64: 3, 144, 128>}, {pipeline_mode = #tpu.pipeline_mode<synchronous>, transform_indices = @transform_4, window_bounds = array<i64: 1, 128>}, {pipeline_mode = #tpu.pipeline_mode<synchronous>, transform_indices = @transform_5, window_bounds = array<i64: 72, 128>}, {pipeline_mode = #tpu.pipeline_mode<synchronous>, transform_indices = @transform_6, window_bounds = array<i64: 1, 128>}, {transform_indices = @transform_7, window_bounds = array<i64: 16, 128>}]} {
    %cst = arith.constant 0.000000e+00 : bf16
    %0 = vector.broadcast %cst : bf16 to vector<1x1x72xbf16>
    %c0 = arith.constant 0 : index
    %c0_0 = arith.constant 0 : index
    %c0_1 = arith.constant 0 : index
    %1 = vector.load %arg9[%c0, %c0_0, %c0_1] : memref<1x18x72xbf16, #tpu.memory_space<vmem>>, vector<1x1x72xbf16>
    tpu.vector_store %arg9[%c0, %c0_0, %c0_1], %0 {strides = array<i32>} : memref<1x18x72xbf16, #tpu.memory_space<vmem>>, vector<1x1x72xbf16>,
    %cst_2 = arith.constant 0.000000e+00 : bf16
    %2 = vector.broadcast %cst_2 : bf16 to vector<1x1x72xbf16>
    %c0_3 = arith.constant 0 : index
    %c17 = arith.constant 17 : index
    %c0_4 = arith.constant 0 : index
    %3 = vector.load %arg9[%c0_3, %c17, %c0_4] : memref<1x18x72xbf16, #tpu.memory_space<vmem>>, vector<1x1x72xbf16>
    tpu.vector_store %arg9[%c0_3, %c17, %c0_4], %2 {strides = array<i32>} : memref<1x18x72xbf16, #tpu.memory_space<vmem>>, vector<1x1x72xbf16>,
    %cst_5 = arith.constant 0.000000e+00 : bf16
    %4 = vector.broadcast %cst_5 : bf16 to vector<1x18x4xbf16>
    %c0_6 = arith.constant 0 : index
    %c0_7 = arith.constant 0 : index
    %c0_8 = arith.constant 0 : index
    %5 = vector.load %arg9[%c0_6, %c0_7, %c0_8] : memref<1x18x72xbf16, #tpu.memory_space<vmem>>, vector<1x18x4xbf16>
    tpu.vector_store %arg9[%c0_6, %c0_7, %c0_8], %4 {strides = array<i32>} : memref<1x18x72xbf16, #tpu.memory_space<vmem>>, vector<1x18x4xbf16>,
    %cst_9 = arith.constant 0.000000e+00 : bf16
    %6 = vector.broadcast %cst_9 : bf16 to vector<1x18x4xbf16>
    %c0_10 = arith.constant 0 : index
    %c0_11 = arith.constant 0 : index
    %c68 = arith.constant 68 : index
    %7 = vector.load %arg9[%c0_10, %c0_11, %c68] : memref<1x18x72xbf16, #tpu.memory_space<vmem>>, vector<1x18x4xbf16>
    tpu.vector_store %arg9[%c0_10, %c0_11, %c68], %6 {strides = array<i32>} : memref<1x18x72xbf16, #tpu.memory_space<vmem>>, vector<1x18x4xbf16>,
    %cst_12 = arith.constant 0.000000e+00 : bf16
    %8 = vector.broadcast %cst_12 : bf16 to vector<1x1x144xbf16>
    %c0_13 = arith.constant 0 : index
    %c0_14 = arith.constant 0 : index
    %c0_15 = arith.constant 0 : index
    %9 = vector.load %arg10[%c0_13, %c0_14, %c0_15] : memref<1x18x144xbf16, #tpu.memory_space<vmem>>, vector<1x1x144xbf16>
    tpu.vector_store %arg10[%c0_13, %c0_14, %c0_15], %8 {strides = array<i32>} : memref<1x18x144xbf16, #tpu.memory_space<vmem>>, vector<1x1x144xbf16>,
    %cst_16 = arith.constant 0.000000e+00 : bf16
    %10 = vector.broadcast %cst_16 : bf16 to vector<1x1x144xbf16>
    %c0_17 = arith.constant 0 : index
    %c17_18 = arith.constant 17 : index
    %c0_19 = arith.constant 0 : index
    %11 = vector.load %arg10[%c0_17, %c17_18, %c0_19] : memref<1x18x144xbf16, #tpu.memory_space<vmem>>, vector<1x1x144xbf16>
    tpu.vector_store %arg10[%c0_17, %c17_18, %c0_19], %10 {strides = array<i32>} : memref<1x18x144xbf16, #tpu.memory_space<vmem>>, vector<1x1x144xbf16>,
    %cst_20 = arith.constant 0.000000e+00 : bf16
    %12 = vector.broadcast %cst_20 : bf16 to vector<1x18x8xbf16>
    %c0_21 = arith.constant 0 : index
    %c0_22 = arith.constant 0 : index
    %c0_23 = arith.constant 0 : index
    %13 = vector.load %arg10[%c0_21, %c0_22, %c0_23] : memref<1x18x144xbf16, #tpu.memory_space<vmem>>, vector<1x18x8xbf16>
    tpu.vector_store %arg10[%c0_21, %c0_22, %c0_23], %12 {strides = array<i32>} : memref<1x18x144xbf16, #tpu.memory_space<vmem>>, vector<1x18x8xbf16>,
    %cst_24 = arith.constant 0.000000e+00 : bf16
    %14 = vector.broadcast %cst_24 : bf16 to vector<1x18x8xbf16>
    %c0_25 = arith.constant 0 : index
    %c0_26 = arith.constant 0 : index
    %c136 = arith.constant 136 : index
    %15 = vector.load %arg10[%c0_25, %c0_26, %c136] : memref<1x18x144xbf16, #tpu.memory_space<vmem>>, vector<1x18x8xbf16>
    tpu.vector_store %arg10[%c0_25, %c0_26, %c136], %14 {strides = array<i32>} : memref<1x18x144xbf16, #tpu.memory_space<vmem>>, vector<1x18x8xbf16>,
    %c0_27 = arith.constant 0 : index
    %c0_28 = arith.constant 0 : index
    %c0_29 = arith.constant 0 : index
    %16 = vector.load %arg1[%c0_27, %c0_28, %c0_29] : memref<1x16x64xf32, #tpu.memory_space<vmem>>, vector<1x16x64xf32>
    %17 = arith.truncf %16 : vector<1x16x64xf32> to vector<1x16x64xbf16>
    %c0_30 = arith.constant 0 : index
    %c1 = arith.constant 1 : index
    %c4 = arith.constant 4 : index
    %18 = vector.load %arg9[%c0_30, %c1, %c4] : memref<1x18x72xbf16, #tpu.memory_space<vmem>>, vector<1x16x64xbf16>
    tpu.vector_store %arg9[%c0_30, %c1, %c4], %17 {strides = array<i32>} : memref<1x18x72xbf16, #tpu.memory_space<vmem>>, vector<1x16x64xbf16>,
    %cst_31 = arith.constant 0.000000e+00 : f32
    %19 = vector.broadcast %cst_31 : f32 to vector<16x128xf32>
    %c0_32 = arith.constant 0 : index
    %c0_33 = arith.constant 0 : index
    %c0_34 = arith.constant 0 : index
    %20 = vector.load %arg9[%c0_32, %c0_33, %c0_34] : memref<1x18x72xbf16, #tpu.memory_space<vmem>>, vector<1x16x72xbf16>
    %21 = vector.shape_cast %20 : vector<1x16x72xbf16> to vector<16x72xbf16>
    %c0_35 = arith.constant 0 : index
    %c0_36 = arith.constant 0 : index
    %c0_37 = arith.constant 0 : index
    %22 = vector.load %arg2[%c0_35, %c0_36, %c0_37] : memref<3x72x128xbf16, #tpu.memory_space<vmem>>, vector<1x72x128xbf16>
    %23 = vector.shape_cast %22 : vector<1x72x128xbf16> to vector<72x128xbf16>
    %cst_38 = arith.constant dense<0.000000e+00> : vector<16x128xf32>
    %24 = tpu.matmul %21, %23, %cst_38 {dimension_numbers = #tpu.dot_dimension_numbers<[1], [0], [0], [1], [0, 0, 1, 1], [], []>} : vector<16x72xbf16>, vector<72x128xbf16>, vector<16x128xf32> -> vector<16x128xf32>
    %25 = arith.addf %19, %24 : vector<16x128xf32>
    %c0_39 = arith.constant 0 : index
    %c1_40 = arith.constant 1 : index
    %c0_41 = arith.constant 0 : index
    %26 = vector.load %arg9[%c0_39, %c1_40, %c0_41] : memref<1x18x72xbf16, #tpu.memory_space<vmem>>, vector<1x16x72xbf16>
    %27 = vector.shape_cast %26 : vector<1x16x72xbf16> to vector<16x72xbf16>
    %c1_42 = arith.constant 1 : index
    %c0_43 = arith.constant 0 : index
    %c0_44 = arith.constant 0 : index
    %28 = vector.load %arg2[%c1_42, %c0_43, %c0_44] : memref<3x72x128xbf16, #tpu.memory_space<vmem>>, vector<1x72x128xbf16>
    %29 = vector.shape_cast %28 : vector<1x72x128xbf16> to vector<72x128xbf16>
    %cst_45 = arith.constant dense<0.000000e+00> : vector<16x128xf32>
    %30 = tpu.matmul %27, %29, %cst_45 {dimension_numbers = #tpu.dot_dimension_numbers<[1], [0], [0], [1], [0, 0, 1, 1], [], []>} : vector<16x72xbf16>, vector<72x128xbf16>, vector<16x128xf32> -> vector<16x128xf32>
    %31 = arith.addf %25, %30 : vector<16x128xf32>
    %c0_46 = arith.constant 0 : index
    %c2 = arith.constant 2 : index
    %c0_47 = arith.constant 0 : index
    %32 = vector.load %arg9[%c0_46, %c2, %c0_47] : memref<1x18x72xbf16, #tpu.memory_space<vmem>>, vector<1x16x72xbf16>
    %33 = vector.shape_cast %32 : vector<1x16x72xbf16> to vector<16x72xbf16>
    %c2_48 = arith.constant 2 : index
    %c0_49 = arith.constant 0 : index
    %c0_50 = arith.constant 0 : index
    %34 = vector.load %arg2[%c2_48, %c0_49, %c0_50] : memref<3x72x128xbf16, #tpu.memory_space<vmem>>, vector<1x72x128xbf16>
    %35 = vector.shape_cast %34 : vector<1x72x128xbf16> to vector<72x128xbf16>
    %cst_51 = arith.constant dense<0.000000e+00> : vector<16x128xf32>
    %36 = tpu.matmul %33, %35, %cst_51 {dimension_numbers = #tpu.dot_dimension_numbers<[1], [0], [0], [1], [0, 0, 1, 1], [], []>} : vector<16x72xbf16>, vector<72x128xbf16>, vector<16x128xf32> -> vector<16x128xf32>
    %37 = arith.addf %31, %36 : vector<16x128xf32>
    %c0_52 = arith.constant 0 : index
    %c0_53 = arith.constant 0 : index
    %38 = vector.load %arg3[%c0_52, %c0_53] : memref<1x128xf32, #tpu.memory_space<vmem>>, vector<1x128xf32>
    %39 = vector.broadcast %38 : vector<1x128xf32> to vector<16x128xf32>
    %40 = arith.addf %37, %39 : vector<16x128xf32>
    %cst_54 = arith.constant 0.000000e+00 : f32
    %41 = vector.broadcast %cst_54 : f32 to vector<16x128xf32>
    %42 = arith.cmpf ogt, %40, %41 : vector<16x128xf32>
    %cst_55 = arith.constant 2.000000e-01 : f32
    %43 = vector.broadcast %cst_55 : f32 to vector<16x128xf32>
    %44 = arith.mulf %43, %40 : vector<16x128xf32>
    %45 = arith.select %42, %40, %44 : vector<16x128xi1>, vector<16x128xf32>
    %46 = vector.shape_cast %45 : vector<16x128xf32> to vector<1x16x128xf32>
    %47 = arith.truncf %46 : vector<1x16x128xf32> to vector<1x16x128xbf16>
    %c0_56 = arith.constant 0 : index
    %c1_57 = arith.constant 1 : index
    %c8 = arith.constant 8 : index
    %48 = vector.load %arg10[%c0_56, %c1_57, %c8] : memref<1x18x144xbf16, #tpu.memory_space<vmem>>, vector<1x16x128xbf16>
    tpu.vector_store %arg10[%c0_56, %c1_57, %c8], %47 {strides = array<i32>} : memref<1x18x144xbf16, #tpu.memory_space<vmem>>, vector<1x16x128xbf16>,
    %cst_58 = arith.constant 0.000000e+00 : f32
    %49 = vector.broadcast %cst_58 : f32 to vector<16x128xf32>
    %c0_59 = arith.constant 0 : index
    %c0_60 = arith.constant 0 : index
    %c0_61 = arith.constant 0 : index
    %50 = vector.load %arg10[%c0_59, %c0_60, %c0_61] : memref<1x18x144xbf16, #tpu.memory_space<vmem>>, vector<1x16x144xbf16>
    %51 = vector.shape_cast %50 : vector<1x16x144xbf16> to vector<16x144xbf16>
    %c0_62 = arith.constant 0 : index
    %c0_63 = arith.constant 0 : index
    %c0_64 = arith.constant 0 : index
    %52 = vector.load %arg4[%c0_62, %c0_63, %c0_64] : memref<3x144x128xbf16, #tpu.memory_space<vmem>>, vector<1x144x128xbf16>
    %53 = vector.shape_cast %52 : vector<1x144x128xbf16> to vector<144x128xbf16>
    %cst_65 = arith.constant dense<0.000000e+00> : vector<16x128xf32>
    %54 = tpu.matmul %51, %53, %cst_65 {dimension_numbers = #tpu.dot_dimension_numbers<[1], [0], [0], [1], [0, 0, 1, 1], [], []>} : vector<16x144xbf16>, vector<144x128xbf16>, vector<16x128xf32> -> vector<16x128xf32>
    %55 = arith.addf %49, %54 : vector<16x128xf32>
    %c0_66 = arith.constant 0 : index
    %c1_67 = arith.constant 1 : index
    %c0_68 = arith.constant 0 : index
    %56 = vector.load %arg10[%c0_66, %c1_67, %c0_68] : memref<1x18x144xbf16, #tpu.memory_space<vmem>>, vector<1x16x144xbf16>
    %57 = vector.shape_cast %56 : vector<1x16x144xbf16> to vector<16x144xbf16>
    %c1_69 = arith.constant 1 : index
    %c0_70 = arith.constant 0 : index
    %c0_71 = arith.constant 0 : index
    %58 = vector.load %arg4[%c1_69, %c0_70, %c0_71] : memref<3x144x128xbf16, #tpu.memory_space<vmem>>, vector<1x144x128xbf16>
    %59 = vector.shape_cast %58 : vector<1x144x128xbf16> to vector<144x128xbf16>
    %cst_72 = arith.constant dense<0.000000e+00> : vector<16x128xf32>
    %60 = tpu.matmul %57, %59, %cst_72 {dimension_numbers = #tpu.dot_dimension_numbers<[1], [0], [0], [1], [0, 0, 1, 1], [], []>} : vector<16x144xbf16>, vector<144x128xbf16>, vector<16x128xf32> -> vector<16x128xf32>
    %61 = arith.addf %55, %60 : vector<16x128xf32>
    %c0_73 = arith.constant 0 : index
    %c2_74 = arith.constant 2 : index
    %c0_75 = arith.constant 0 : index
    %62 = vector.load %arg10[%c0_73, %c2_74, %c0_75] : memref<1x18x144xbf16, #tpu.memory_space<vmem>>, vector<1x16x144xbf16>
    %63 = vector.shape_cast %62 : vector<1x16x144xbf16> to vector<16x144xbf16>
    %c2_76 = arith.constant 2 : index
    %c0_77 = arith.constant 0 : index
    %c0_78 = arith.constant 0 : index
    %64 = vector.load %arg4[%c2_76, %c0_77, %c0_78] : memref<3x144x128xbf16, #tpu.memory_space<vmem>>, vector<1x144x128xbf16>
    %65 = vector.shape_cast %64 : vector<1x144x128xbf16> to vector<144x128xbf16>
    %cst_79 = arith.constant dense<0.000000e+00> : vector<16x128xf32>
    %66 = tpu.matmul %63, %65, %cst_79 {dimension_numbers = #tpu.dot_dimension_numbers<[1], [0], [0], [1], [0, 0, 1, 1], [], []>} : vector<16x144xbf16>, vector<144x128xbf16>, vector<16x128xf32> -> vector<16x128xf32>
    %67 = arith.addf %61, %66 : vector<16x128xf32>
    %c0_80 = arith.constant 0 : index
    %c0_81 = arith.constant 0 : index
    %68 = vector.load %arg5[%c0_80, %c0_81] : memref<1x128xf32, #tpu.memory_space<vmem>>, vector<1x128xf32>
    %69 = vector.broadcast %68 : vector<1x128xf32> to vector<16x128xf32>
    %70 = arith.addf %67, %69 : vector<16x128xf32>
    %c0_82 = arith.constant 0 : index
    %c0_83 = arith.constant 0 : index
    %71 = vector.load %arg6[%c0_82, %c0_83] : memref<72x128xbf16, #tpu.memory_space<vmem>>, vector<72x128xbf16>
    %cst_84 = arith.constant dense<0.000000e+00> : vector<16x128xf32>
    %72 = tpu.matmul %27, %71, %cst_84 {dimension_numbers = #tpu.dot_dimension_numbers<[1], [0], [0], [1], [0, 0, 1, 1], [], []>} : vector<16x72xbf16>, vector<72x128xbf16>, vector<16x128xf32> -> vector<16x128xf32>
    %c0_85 = arith.constant 0 : index
    %c0_86 = arith.constant 0 : index
    %73 = vector.load %arg7[%c0_85, %c0_86] : memref<1x128xf32, #tpu.memory_space<vmem>>, vector<1x128xf32>
    %74 = vector.broadcast %73 : vector<1x128xf32> to vector<16x128xf32>
    %75 = arith.addf %72, %74 : vector<16x128xf32>
    %76 = arith.addf %70, %75 : vector<16x128xf32>
    %cst_87 = arith.constant 0.000000e+00 : f32
    %77 = vector.broadcast %cst_87 : f32 to vector<16x128xf32>
    %78 = arith.cmpf ogt, %76, %77 : vector<16x128xf32>
    %cst_88 = arith.constant 2.000000e-01 : f32
    %79 = vector.broadcast %cst_88 : f32 to vector<16x128xf32>
    %80 = arith.mulf %79, %76 : vector<16x128xf32>
    %81 = arith.select %78, %76, %80 : vector<16x128xi1>, vector<16x128xf32>
    %c0_89 = arith.constant 0 : index
    %c0_90 = arith.constant 0 : index
    %82 = vector.load %arg8[%c0_89, %c0_90] : memref<16x128xf32, #tpu.memory_space<vmem>>, vector<16x128xf32>
    tpu.vector_store %arg8[%c0_89, %c0_90], %81 {strides = array<i32>} : memref<16x128xf32, #tpu.memory_space<vmem>>, vector<16x128xf32>,
    return
  }
  func.func @transform_0(%arg0: i32) -> (i32, i32, i32) {
    %c0_i32 = arith.constant 0 : i32
    %c0_i32_0 = arith.constant 0 : i32
    %c0_i32_1 = arith.constant 0 : i32
    return %arg0, %c0_i32, %c0_i32_0 : i32, i32, i32
  }
  func.func @transform_1(%arg0: i32) -> (i32, i32, i32) {
    %c0_i32 = arith.constant 0 : i32
    %c0_i32_0 = arith.constant 0 : i32
    %c0_i32_1 = arith.constant 0 : i32
    %c0_i32_2 = arith.constant 0 : i32
    return %c0_i32, %c0_i32_0, %c0_i32_1 : i32, i32, i32
  }
  func.func @transform_2(%arg0: i32) -> (i32, i32) {
    %c0_i32 = arith.constant 0 : i32
    %c0_i32_0 = arith.constant 0 : i32
    %c0_i32_1 = arith.constant 0 : i32
    return %c0_i32, %c0_i32_0 : i32, i32
  }
  func.func @transform_3(%arg0: i32) -> (i32, i32, i32) {
    %c0_i32 = arith.constant 0 : i32
    %c0_i32_0 = arith.constant 0 : i32
    %c0_i32_1 = arith.constant 0 : i32
    %c0_i32_2 = arith.constant 0 : i32
    return %c0_i32, %c0_i32_0, %c0_i32_1 : i32, i32, i32
  }
  func.func @transform_4(%arg0: i32) -> (i32, i32) {
    %c0_i32 = arith.constant 0 : i32
    %c0_i32_0 = arith.constant 0 : i32
    %c0_i32_1 = arith.constant 0 : i32
    return %c0_i32, %c0_i32_0 : i32, i32
  }
  func.func @transform_5(%arg0: i32) -> (i32, i32) {
    %c0_i32 = arith.constant 0 : i32
    %c0_i32_0 = arith.constant 0 : i32
    %c0_i32_1 = arith.constant 0 : i32
    return %c0_i32, %c0_i32_0 : i32, i32
  }
  func.func @transform_6(%arg0: i32) -> (i32, i32) {
    %c0_i32 = arith.constant 0 : i32
    %c0_i32_0 = arith.constant 0 : i32
    %c0_i32_1 = arith.constant 0 : i32
    return %c0_i32, %c0_i32_0 : i32, i32
  }
  func.func @transform_7(%arg0: i32) -> (i32, i32) {
    %c0_i32 = arith.constant 0 : i32
    %c0_i32_0 = arith.constant 0 : i32
    return %arg0, %c0_i32 : i32, i32
  }
}

</mosaic_0001>

<bundles_post_ra>
// kernel: tpu_custom_call.1
= control target key start
LH: loop header
LB: loop body
LE: loop exit
PB: predicated region body
PF: predicated region fallthrough
CT: control target
= control target key end

     0   :  { %s2359_s0 = inlined_call_operand.hbm [shape: f32[2,16,64], index: 0, kind: input, shape index: {}]   ;;  %s2360_s1 = inlined_call_operand.hbm [shape: bf16[3,72,128], index: 1, kind: input, shape index: {}]   ;;  %s2361_s2 = inlined_call_operand.vmem [shape: f32[1,128], index: 2, kind: input, shape index: {}]   ;;  %s2362_s3 = inlined_call_operand.hbm [shape: bf16[3,144,128], index: 3, kind: input, shape index: {}]   ;;  %s2363_s4 = inlined_call_operand.vmem [shape: f32[1,128], index: 4, kind: input, shape index: {}]   ;;  %s2364_s5 = inlined_call_operand.hbm [shape: bf16[72,128], index: 5, kind: input, shape index: {}]   ;;  %s2365_s6 = inlined_call_operand.vmem [shape: f32[1,128], index: 6, kind: input, shape index: {}]   ;;  %s2366_s7 = inlined_call_operand.hbm [shape: f32[32,128], index: 7, kind: output, shape index: {}]  }
   0x1   :  { %2374 = sst [smem:[#allocation17_spill]] %s2360_s1 }
   0x2   :  { %12 = vsyncpa [#allocation5], 0 }
   0x3   :  { %14 = vsyncpa [#allocation5 + $0x1], 0 }
   0x4   :  { %15 = vsyncpa [#allocation8], 0 }
   0x5   :  { %16 = vsyncpa [#allocation11], 0 }
   0x6   :  { %17 = vsyncpa [#allocation6], 0 }
   0x7   :  { %19 = vsyncpa [#allocation6 + $0x1], 0  ;;  %s1979_s24 = smov 0   ;;  %s1981_s25 = smov 0  }
   0x8   :  { %s1983_s26 = smov 0   ;;  %s1985_s27 = smov 0  }
   0x9 LB: > { %s2000_s28 = sadd.s32 4294967295, %s1922_s27   ;;  %s1427_s29 = sadd.s32 4294967294, %s1922_s27   ;;  %s1922_s27 = sphi %s1985_s27, %s2408_s27   ;;  %s1918_s26 = sphi %s1983_s26, %s2407_s26   ;;  %s1914_s25 = sphi %s1981_s25, %s2406_s25   ;;  %s1910_s24 = sphi %s1979_s24, %s2405_s24  }
   0xa   : > { %p45_p0 = scmp.ne.s32.totalorder %s1914_s25, %s1910_s24  ;;  %p2367_p1 = scmp.eq.s32.totalorder %s2000_s28, 0 }
   0xb   : > { %p201_p3 = scmp.eq.s32.totalorder %s1427_s29, 1  ;;  %p1428_p5 = scmp.ge.s32.totalorder %s1922_s27, 1 }
   0xc   : > { %p2009_p4 = por %p2367_p1, %p45_p0  ;;  %p208_p7 = scmp.lt.s32.totalorder %s1922_s27, 3 }
   0xd   : > { %p2014_p6 = por %p201_p3, %p45_p0  ;;  %s1924_s10 = smov [#allocation7]  }
   0xe   : > { %s2375_s30 = scalar_select %p2009_p4, 1, 0 }
   0xf   : > { %s2376_s8 = scalar_select %p2014_p6, 1, 0 }
  0x10   : > { %p2019_p8 = pnand %p1428_p5, %p208_p7  ;;  %s220_s11 = sshll.u32 %s1924_s10, 4  ;;  %s221_s11 = int_to_ptr.vmem [resolvable:$true] %s220_s11 }
  0x11   : > { %s1925_s13 = smov [#allocation9]   ;;  %s1926_s15 = smov [#allocation10]  }
  0x12   : > { %s2377_s9 = scalar_select %p2019_p8, 1, 0 }
  0x13   : > { %p1619_p9 = pneg %p2019_p8  ;;  %s236_s14 = sshll.u32 %s1925_s13, 4  ;;  %s237_s14 = int_to_ptr.vmem [resolvable:$true] %s236_s14 }
  0x14   : > { %s252_s16 = sshll.u32 %s1926_s15, 4  ;;  %s1755_s17 = scalar_lea.vmem %s221_s11, 1728  ;;  %s253_s16 = int_to_ptr.vmem [resolvable:$true] %s252_s16 }
  0x15   : > { %p2028_p11 = pnand %p1619_p9, %p2367_p1  ;;  %p1756_p13 = scmp.ne.s32.totalorder %s221_s11, %s1755_s17 }
  0x16   : > { %p1763_p5 = scmp.lt.s32.totalorder %s221_s11, %s221_s11  ;;  %p1764_p7 = scmp.lt.s32.totalorder %s1755_s17, %s1755_s17 }
  0x17   : > { %p1746_p12 = pneg %p2028_p11 }
  0x18   : > { %p1765_p9 = por %p1764_p7, %p1763_p5 }
  0x19   : > { %p1758_p0 = pnand %p1756_p13, %p1746_p12 }
  0x1b   : > { %p1759_p3 = pneg %p1758_p0 }
  0x1d   : > { %p1766_p10 = pnand %p1765_p9, %p1759_p3 }
  0x1f   : > { %1769 = shalt.err (!%p1766_p10)
}
  0x20   : > { %s1927_s18 = smov 64   ;;  %s1928_s19 = smov 4  }
  0x21   : > { %s2379_s1 = sld [smem:[#allocation17_spill]]  ;;  %s1781_s22 = scalar_lea.vmem %s237_s14, 3456 }
  0x22   : > { %p1782_p1 = scmp.ne.s32.totalorder %s237_s14, %s1781_s22  ;;  %p1789_p2 = scmp.lt.s32.totalorder %s237_s14, %s237_s14 }
  0x23   : > { %p1790_p6 = scmp.lt.s32.totalorder %s1781_s22, %s1781_s22 }
  0x24   : > { %p1784_p13 = pnand %p1782_p1, %p1746_p12 }
  0x25   : > { %p1791_p5 = por %p1790_p6, %p1789_p2 }
  0x26   : > { %p1785_p0 = pneg %p1784_p13 }
  0x27   : > { %1622 = dma.hbm_to_vmem [thread:$0]  (!%p2028_p11), %s2379_s1, 1728, %s221_s11, [#allocation8], %s1927_s18, %s1927_s18, %s1928_s19  }
  0x28   : > { %p1792_p3 = pnand %p1791_p5, %p1785_p0 }
  0x2a   : > { %1795 = shalt.err (!%p1792_p3)
}
  0x2b   : > { %1625 = dma.hbm_to_vmem [thread:$0]  (!%p2028_p11), %s2362_s3, 3456, %s237_s14, [#allocation8], %s1927_s18, %s1927_s18, %s1928_s19  }
  0x2c   : > { %s1807_s10 = scalar_lea.vmem %s253_s16, 576  ;;  %p1815_p9 = scmp.lt.s32.totalorder %s253_s16, %s253_s16 }
  0x2d   : > { %p1808_p10 = scmp.ne.s32.totalorder %s253_s16, %s1807_s10  ;;  %p1816_p13 = scmp.lt.s32.totalorder %s1807_s10, %s1807_s10 }
  0x2f   : > { %p1810_p7 = pnand %p1808_p10, %p1746_p12  ;;  %p1817_p4 = por %p1816_p13, %p1815_p9 }
  0x31   : > { %p1811_p1 = pneg %p1810_p7 }
  0x33   : > { %p1818_p2 = pnand %p1817_p4, %p1811_p1 }
  0x35   : > { %1821 = shalt.err (!%p1818_p2)
}
  0x36   : > { %1628 = dma.hbm_to_vmem [thread:$0]  (!%p2028_p11), %s2364_s5, 576, %s253_s16, [#allocation11], %s1927_s18, %s1927_s18, %s1928_s19  }
  0x37   : > { %s2059_s14 = sadd.s32 1, %s1922_s27   ;;  %s32_s12 = sadd.s32 1, %s1918_s26 }
  0x38   : > { %s29_s15 = ssub.s32 %s1922_s27, %s2059_s14  ;;  %p39_p6 = scmp.ne.s32.totalorder %s1918_s26, %s1914_s25 }
  0x39   : > { %p30_p4 = scmp.eq.s32.totalorder %s29_s15, 0  ;;  %p40_p12 = scmp.eq.s32.totalorder %s1922_s27, 0 }
  0x3a   : > { %p1640_p0 = scmp.lt.s32.totalorder %s1922_s27, 2  ;;  %p2380_p3 = scmp.eq.s32.totalorder %s2000_s28, 1 }
  0x3b   : > { %s2069_s17 = scalar_select %p30_p4, %s1918_s26, %s32_s12  }
  0x3c   : > { %p41_p5 = por %p40_p12, %p39_p6  ;;  %p2073_p10 = por %p2380_p3, %p39_p6 }
  0x3d   : > { %s269_s21 = sand.u32 1, %s1918_s26   ;;  %s1517_s22 = sshll.u32 %s1922_s27, 8 }
  0x3e   : > { %s2381_s20 = scalar_select %p2073_p10, 1, 0 }
  0x3f   : > { %s1433_s16 = sshll.u32 %s269_s21, 4  ;;  %s2082_s23 = scalar_lea.hbm %s2359_s0, %s1517_s22 }
  0x40   : > { %s273_s29 = scalar_lea.vmem [#allocation4], %s1433_s16  ;;  %p2084_p11 = pnand %p1640_p0, %p41_p5 }
  0x41   : > { %s280_s10 = sshll.u32 %s273_s29, 4  ;;  %s2090_s13 = scalar_lea.sflag [#allocation5], %s269_s21  ;;  %s2088_s10 = int_to_ptr.vmem [resolvable:$true] %s280_s10 }
  0x42   : > { %s1822_s15 = scalar_lea.hbm %s2082_s23, 256  ;;  %p1824_p1 = pneg %p2084_p11 }
  0x43   : > { %p1823_p7 = scmp.ne.s32.totalorder %s2082_s23, %s1822_s15  ;;  %s1827_s16 = scalar_lea.hbm %s2359_s0, 512 }
  0x44   : > { %p1828_p2 = scmp.lt.s32.totalorder %s2082_s23, %s2359_s0  ;;  %p1829_p4 = scmp.lt.s32.totalorder %s1827_s16, %s1822_s15 }
  0x45   : > { %p1825_p9 = pnand %p1824_p1, %p1823_p7 }
  0x46   : > { %p1830_p6 = por %p1829_p4, %p1828_p2 }
  0x47   : > { %p1826_p13 = pneg %p1825_p9 }
  0x49   : > { %p1831_p12 = pnand %p1830_p6, %p1826_p13 }
  0x4b   : > { %1834 = shalt.err (!%p1831_p12)
}
  0x4c   : > { %s1835_s21 = scalar_lea.vmem %s2088_s10, 256  ;;  %s1929_s29 = smov [#allocation4]  }
  0x4d   : > { %p1836_p0 = scmp.ne.s32.totalorder %s2088_s10, %s1835_s21  ;;  %s1840_s1 = sshll.u32 %s1929_s29, 4  ;;  %s1841_s1 = int_to_ptr.vmem [resolvable:$false] %s1840_s1 }
  0x4e   : > { %s1842_s12 = scalar_lea.vmem %s1841_s1, 512  ;;  %p1843_p7 = scmp.lt.s32.totalorder %s2088_s10, %s1841_s1 }
  0x4f   : > { %p1838_p5 = pnand %p1836_p0, %p1824_p1  ;;  %p1844_p9 = scmp.lt.s32.totalorder %s1842_s12, %s1835_s21 }
  0x51   : > { %p1839_p3 = pneg %p1838_p5  ;;  %p1845_p10 = por %p1844_p9, %p1843_p7 }
  0x53   : > { %p1846_p8 = pnand %p1845_p10, %p1839_p3 }
  0x55   : > { %1849 = shalt.err (!%p1846_p8)
}
  0x56   : > { %s1930_s15 = smov 128   ;;  %s1931_s22 = smov 8  }
  0x57   : > { %1632 = dma.hbm_to_vmem [thread:$0]  (!%p2084_p11), %s2082_s23, 256, %s2088_s10, %s2090_s13, %s1930_s15, %s1930_s15, %s1931_s22  }
  0x58   : > { %p2383_p1 = scmp.ne.s32.totalorder %s2377_s9, 0 }
  0x59   : > { %s2114_s16 = sand.u32 (!%p2383_p1), 1, %s1914_s25   ;;  %p2384_p8 = scmp.ne.s32.totalorder (!%p2383_p1), %s2375_s30, 0 }
  0x5a   : > { %292 = sbr.rel (%p2383_p1) target bundleno = 873 (0x369), region = 48  ;;  %s1437_s1 = sshll.u32 (!%p2383_p1), %s2114_s16, 4 }
  0x5b   : > { %s295_s18 = scalar_lea.sflag (!%p2383_p1), [#allocation5], %s2114_s16  ;;  %s298_s19 = scalar_lea.vmem (!%p2383_p1), [#allocation4], %s1437_s1 }
  0x5f   : > { %1893 = dma.done.wait (%p2384_p8), %s295_s18, 256  }
  0x60   : > { %1895 = vsyncadd (%p2384_p8), %s295_s18, 4294967040  ;;  %p2385_p10 = scmp.eq.s32.totalorder %s2000_s28, 0 }
  0x62   : > { %1897 = dma.done.wait (%p2385_p10), [#allocation8], 5184   ;;  %p2386_p11 = pmov %p2385_p10 }
  0x63   : > { %p2387_p13 = pmov %p2385_p10 }
  0x64   : > { %1899 = vsyncadd (%p2386_p11), [#allocation8], 4294962112 }
  0x65   : > { %1901 = dma.done.wait (%p2387_p13), [#allocation11], 576   ;;  %p2388_p2 = pmov %p2385_p10 }
  0x66   : > { %v1932_v0 = vmov 0.0   ;;  %vm343_vm0 = vcmask 581632   ;;  %vm354_vm1 = vcmask 27648   ;;  %vm349_vm2 = vsmask.f32 7938  ;;  %v390_v4 = vld [vmem:[%s298_s19] sm:$0xff] }
  0x67   : > { %1903 = vsyncadd (%p2388_p2), [#allocation11], 4294966720  ;;  %1561 = vmatprep.subr.bf16.mxu1 %v1932_v0  ;;  %1547 = vmatprep.subr.bf16.mxu0 %v1932_v0  ;;  %vm359_vm3 = vcmask 585248   ;;  %v1933_v1 = vmov 0   ;;  %vm344_vm4 = vsmask.f32 256  ;;  %v1518_v6 = vpack.c.bf16 %v390_v4, %v390_v4 }
  0x68   : > { %356 = vst.msk [vmem:[#allocation2 + $0x4] sm:$0xf] %vm354_vm1, %v1933_v1  ;;  %vm2139_vm5 = vmand %vm343_vm0, %vm344_vm4  ;;  %vm398_vm6 = vsmask.f32 4368  ;;  %v391_v5 = vld [vmem:[%s298_s19 + $0x8] sm:$0xff]  ;;  %vm512_vm8 = vcmask 1043456  }
  0x69   : > { %361 = vst.msk [vmem:[#allocation2 + $0x4] sm:$0xf] %vm359_vm3, %v1933_v1  ;;  %vm2144_vm7 = vmand %vm343_vm0, %vm349_vm2  ;;  %v1519_v7 = vpack.c.bf16 %v391_v5, %v391_v5  ;;  %v1690_v8 = vld [vmem:[#allocation7 + $0x20] ss:$0 sps:$4 sm:$0xff]   ;;  %vm1934_vm9 = vmmov 0   ;;  %vm357_vm10 = vcmask 24576  }
  0x6a   : > { %1571 = vmatprep.mubr.msk.bf16.mxu1 %vm1934_vm9, %v1932_v0  ;;  %1557 = vmatprep.mubr.msk.bf16.mxu0 %vm1934_vm9, %v1932_v0  ;;  %v346_v9 = vld [vmem:[#allocation2] sm:$0x1]  ;;  %v351_v10 = vld [vmem:[#allocation2 + $0x8] sm:$0x1]  ;;  %vm362_vm11 = vcmask 582176   ;;  %v401_v11 = vshrl.u32 %v1518_v6, 16  ;;  %vm2165_vm12 = vmor %vm344_vm4, %vm398_vm6 }
  0x6b   : > { %v404_v12 = vshll.u32 %v1518_v6, 16  ;;  %v409_v13 = vshrl.u32 %v1519_v7, 16  ;;  %v412_v14 = vshll.u32 %v1519_v7, 16  ;;  %v587_v15 = vsel %vm512_vm8, %v1690_v8, 0  ;;  %v1691_v16 = vld [vmem:[#allocation7 + $0x18] sm:$0xff]   ;;  %s1935_s30 = smov 4  }
  0x6c   : > { %v347_v17 = vsel %vm2139_vm5, 0, %v346_v9  ;;  %v352_v18 = vsel %vm2144_vm7, 0, %v351_v10  ;;  %v1692_v19 = vld [vmem:[#allocation7 + $0x44] ss:$0 sps:$4 sm:$0xff]   ;;  %v403_v20 = vrot.slane %v401_v11, 7  ;;  %1562 = vmatpush3.bf16.msra.mxu1 %v587_v15  ;;  %v1694_v23 = vld [vmem:[#allocation7 + $0x3c] sm:$0xff]  }
  0x6d   : > { %v411_v21 = vrot.slane %v409_v13, 7  ;;  %348 = vst [vmem:[#allocation2] sm:$0x1] %v347_v17  ;;  %353 = vst [vmem:[#allocation2 + $0x8] sm:$0x1] %v352_v18  ;;  %1563 = vmatprep.subr.bf16.mxu1 %v1932_v0  ;;  %v514_v22 = vsel %vm512_vm8, %v1692_v19, 0 }
  0x6e   : > { %355 = vst.msk [vmem:[#allocation2] sm:$0xf] %vm354_vm1, %v1933_v1  ;;  %v406_v24 = vor.u32 %v404_v12, %v403_v20  ;;  %v407_v25 = vrot.slane %v403_v20, 4  ;;  %1548 = vmatpush3.bf16.msra.mxu0 %v514_v22  ;;  %v1693_v30 = vld [vmem:[#allocation7 + $0x10] sm:$0xff]   ;;  %v1695_v32 = vld [vmem:[#allocation7 + $0x8] sm:$0xff]   ;;  %v1697_v34 = vld [vmem:[#allocation7] sm:$0xff]  }
  0x6f   : > { %358 = vst.msk [vmem:[#allocation2 + $0x8] sm:$0x1] %vm357_vm10, %v1933_v1  ;;  %v416_v26 = vrot.slane %v411_v21, 4  ;;  %v414_v27 = vor.u32 %v412_v14, %v411_v21  ;;  %1549 = vmatprep.subr.bf16.mxu0 %v1932_v0  ;;  %v1696_v31 = vld [vmem:[#allocation7 + $0x34] sm:$0xff]   ;;  %v1698_v33 = vld [vmem:[#allocation7 + $0x2c] sm:$0xff]   ;;  %v1701_v35 = vld [vmem:[#allocation7 + $0x24] sm:$0xff]  }
  0x70   : > { %360 = vst.msk [vmem:[#allocation2] sm:$0xf] %vm359_vm3, %v1933_v1  ;;  %417 = vrot.lane.b32.xlu0 %v406_v24, %s1935_s30  ;;  %1564 = vmatpush3.bf16.msra.mxu1 %v1691_v16  ;;  %vm426_vm13 = vcmask 551968   ;;  %vm433_vm14 = vcmask 548896   ;;  %vm2371_vm1 = vcmask 588800   ;;  %v1704_v56 = vld [vmem:[#allocation7 + $0x60] sm:$0xff]  }
  0x71   : > { %363 = vst.msk [vmem:[#allocation2 + $0x8] sm:$0x1] %vm362_vm11, %v1933_v1  ;;  %421 = vrot.lane.b32.xlu1 %v416_v26, %s1935_s30  ;;  %v415_v29 = vsel %vm2165_vm12, %v407_v25, %v414_v27  ;;  %1565 = vmatprep.subr.bf16.mxu1 %v1932_v0  ;;  %vm427_vm15 = vmand %vm426_vm13, %vm349_vm2  ;;  %v1703_v49 = vld [vmem:[#allocation7 + $0x68] ss:$0 sps:$4 sm:$0xff]   ;;  %vm2373_vm3 = vsmask.f32 7424 }
  0x72   : > { %1550 = vmatpush3.bf16.msra.mxu0 %v1694_v23  ;;  %vm434_vm0 = vmand %vm433_vm14, %vm344_vm4  ;;  %v679_v54 = vsel %vm512_vm8, %v1703_v49, 0  ;;  %v1705_v57 = vld [vmem:[#allocation7 + $0x58] sm:$0xff]   ;;  %v1706_v58 = vld [vmem:[#allocation7 + $0x50] sm:$0xff]   ;;  %vm2372_vm5 = vcmask 1046528   ;;  %vm364_vm6 = vcmask 1040384   ;;  %vm366_vm7 = vcmask 126980  }
  0x73   : > { %1551 = vmatprep.subr.bf16.mxu0 %v1932_v0  ;;  %v1707_v61 = vld [vmem:[#allocation7 + $0x48] sm:$0xff]   ;;  %vm380_vm10 = vcmask 60416   ;;  %vm367_vm11 = vsmask.f32 4352  ;;  %v1709_v5 = vld [vmem:[#allocation9 + $0x30] sm:$0xff]   ;;  %vm385_vm14 = vcmask 126016  }
  0x74   : > { %419 = vrot.lane.b32.xlu0 %v415_v29, %s1935_s30  ;;  %1566 = vmatpush3.bf16.msra.mxu1 %v1693_v30  ;;  %v1708_v3 = vld [vmem:[#allocation9 + $0x38] sm:$0xff]   ;;  %v1710_v4 = vld [vmem:[#allocation9 + $0x80] sm:$0xff]   ;;  %382 = vst.msk [vmem:[#allocation3 + $0x8] sm:$0xf] %vm380_vm10, %v1933_v1  ;;  %v377_v10 = vld [vmem:[#allocation3 + $0x10] sm:$0x11] }
  0x75   : > { %1567 = vmatprep.subr.bf16.mxu1 %v1932_v0  ;;  %v1712_v6 = vld [vmem:[#allocation9 + $0x78] sm:$0xff]   ;;  %387 = vst.msk [vmem:[#allocation3 + $0xc] sm:$0xf] %vm385_vm14, %v1933_v1  ;;  %v1711_v11 = vld [vmem:[#allocation9 + $0x28] sm:$0xff]   ;;  %v1714_v12 = vld [vmem:[#allocation9 + $0x70] sm:$0xff]   ;;  %s1936_s10 = smov 8  }
  0x76   : > { %1552 = vmatpush3.bf16.msra.mxu0 %v1696_v31  ;;  %v370_v7 = vld [vmem:[#allocation3] sm:$0x11]  ;;  %v1465_v26 = vld [vmem:[%s2361_s2] ss:$0 sm:$0xff]  ;;  %s1522_s12 = sshll.u32 %s2000_s28, 8  ;;  %s340_s15 = scalar_lea.vmem [#allocation12], %s1437_s1 }
  0x77   : > { %1553 = vmatprep.subr.bf16.mxu0 %v1932_v0  ;;  %v428_v36 = vld [vmem:[#allocation2] sm:$0xf]  ;;  %v1713_v14 = vld [vmem:[#allocation9 + $0x20] sm:$0xff]   ;;  %v1715_v15 = vld [vmem:[#allocation9 + $0x18] sm:$0xff]   ;;  %s1325_s22 = sshll.u32 %s340_s15, 4  ;;  %s2313_s30 = scalar_lea.hbm %s2366_s7, %s1522_s12  ;;  %s2315_s22 = int_to_ptr.vmem [resolvable:$true] %s1325_s22 }
  0x78   : > { %1568 = vmatpush3.bf16.msra.mxu1 %v1695_v32  ;;  %v435_v37 = vld [vmem:[#allocation2 + $0x8] sm:$0x1]  ;;  %v1716_v32 = vld [vmem:[#allocation9 + $0x68] sm:$0xff]   ;;  %s1312_s28 = scalar_lea.sflag [#allocation6], %s2114_s16  ;;  %s1850_s9 = scalar_lea.vmem %s2315_s22, 256 }
  0x79   : > { %1569 = vmatprep.subr.bf16.mxu1 %v1932_v0  ;;  %p1851_p4 = scmp.ne.s32.totalorder %s2315_s22, %s1850_s9  ;;  %p2402_p6 = scmp.ne.s32.totalorder %s2381_s20, 0 }
  0x7a   : > { %1554 = vmatpush3.bf16.msra.mxu0 %v1698_v33  ;;  %s1937_s1 = smov [#allocation12]  }
  0x7b   : > { %1555 = vmatprep.subr.bf16.mxu0 %v1932_v0  ;;  %p1852_p12 = pnand %p1851_p4, %p2402_p6  ;;  %s1854_s23 = sshll.u32 %s1937_s1, 4  ;;  %s1855_s23 = int_to_ptr.vmem [resolvable:$false] %s1854_s23 }
  0x7c   : > { %1570 = vmatpush3.bf16.msra.mxu1 %v1697_v34  ;;  %v1717_v34 = vld [vmem:[#allocation9 + $0x10] sm:$0xff]   ;;  %s1856_s11 = scalar_lea.vmem %s1855_s23, 512  ;;  %p1857_p5 = scmp.lt.s32.totalorder %s2315_s22, %s1855_s23 }
  0x7d   : > { %934 = vmatprep.subr.bf16.mxu1 %v1933_v1  ;;  %p1853_p0 = pneg %p1852_p12  ;;  %p1858_p3 = scmp.lt.s32.totalorder %s1856_s11, %s1850_s9 }
  0x7e   : > { %1556 = vmatpush3.bf16.msra.mxu0 %v1701_v35 }
  0x7f   : > { %1575 = vmatprep.subr.bf16.mxu0 %v1932_v0  ;;  %p1859_p7 = por %p1858_p3, %p1857_p5 }
  0x81   : > { %p1860_p9 = pnand %p1859_p7, %p1853_p0 }
  0xe2   : > { %v418_v38 = vpop.permute.xlu0 %417 }
  0xe3   : > { %v422_v39 = vpop.permute.xlu1 %421  ;;  %v429_v40 = vsel %vm427_vm15, %v418_v38, %v428_v36  ;;  %vm368_vm15 = vmand %vm366_vm7, %vm367_vm11 }
  0xe4   : > { %v436_v41 = vsel %vm434_vm0, %v422_v39, %v435_v37  ;;  %430 = vst [vmem:[#allocation2] sm:$0xf] %v429_v40  ;;  %vm374_vm0 = vsmask.f32 7954  ;;  %v1718_v40 = vld [vmem:[#allocation9 + $0x60] sm:$0xff]  }
  0xe5   : > { %437 = vst [vmem:[#allocation2 + $0x8] sm:$0x1] %v436_v41 }
  0xe6   : > { %v420_v42 = vpop.permute.xlu0 %419 }
  0xe7   : > { %432 = vst.msk [vmem:[#allocation2 + $0x4] sm:$0xf] %vm426_vm13, %v420_v42  ;;  %vm365_vm13 = vmand %vm364_vm6, %vm344_vm4  ;;  %v1719_v42 = vld [vmem:[#allocation9 + $0x8] sm:$0xff]  }
  0xeb   : > { %v438_v44 = vld [vmem:[#allocation2] sm:$0xf] }
  0xec   : > { %v1702_v43 = vld [vmem:[#allocation2 + $0x8] ss:$0 sps:$4 sm:$0x11]   ;;  %v630_v59 = vld [vmem:[#allocation2] sm:$0xe] }
  0xed   : > { %v477_v47 = vshll.u32 %v1702_v43, 16  ;;  %v646_v63 = vrot.slane %v1702_v43, 1 }
  0xee   : > { %v439_v45 = vld [vmem:[#allocation2 + $0x4] sm:$0xf] }
  0xef   : > { %v1444_v46 = vcombine.low %v438_v44, %v439_v45  ;;  %v479_v52 = vrot.slane %v477_v47, 1  ;;  %v1458_v60 = vcombine.low %v630_v59, %v439_v45  ;;  %v1721_v47 = vld [vmem:[#allocation9] sm:$0xff]  }
  0xf1   : > { %1572 = vmatmul.mubr.msk.bf16.vlgmr.msra.gmra.mxu1 %vm2371_vm1, %v1444_v46  ;;  %v472_v48 = vshll.u32 %v1444_v46, 16  ;;  %v470_v50 = vshrl.u32 %v1444_v46, 16  ;;  %v645_v62 = vrot.slane %v1458_v60, 1  ;;  %v1720_v46 = vld [vmem:[#allocation9 + $0x58] sm:$0xff]  }
  0xf2   : > { %935 = vmatpush1.bf16.msra.mxu1 %v1710_v4 }
  0xf3   : > { %v474_v51 = vrot.slane %v472_v48, 1  ;;  %v647_v2 = vsel %vm2372_vm5, %v645_v62, %v646_v63  ;;  %936 = vmatprep.subr.bf16.mxu1 %v1933_v1  ;;  %vm2214_vm5 = vmand %vm364_vm6, %vm349_vm2  ;;  %vm383_vm6 = vcmask 57344   ;;  %v1726_v63 = vld [vmem:[#allocation9 + $0x88] sm:$0xff]  }
  0xf5   : > { %v475_v53 = vor.u32 %v474_v51, %v470_v50  ;;  %v1722_v51 = vld [vmem:[#allocation9 + $0x50] sm:$0xff]  }
  0xf6   : > { %937 = vmatpush1.bf16.msra.mxu1 %v1712_v6 }
  0xf7   : > { %v2189_v55 = vsel %vm2373_vm3, %v475_v53, %v479_v52  ;;  %vm375_vm3 = vmand %vm366_vm7, %vm374_vm0  ;;  %938 = vmatprep.subr.bf16.mxu1 %v1933_v1  ;;  %vm778_vm7 = vcmask 1043520  }
  0xf8   : > { %1558 = vmatmul.mubr.msk.bf16.vlgmr.msra.gmra.mxu0 %vm2371_vm1, %v2189_v55 }
  0xf9   : > { %1576 = vmatpush3.bf16.msra.mxu0 %v679_v54  ;;  %1585 = vmatprep.mubr.msk.bf16.mxu0 %vm1934_vm9, %v1932_v0  ;;  %v1723_v54 = vld [vmem:[#allocation9 + $0x40] sm:$0xff]  }
  0xfa   : > { %1577 = vmatprep.subr.bf16.mxu0 %v1932_v0  ;;  %939 = vmatpush1.bf16.msra.mxu1 %v1714_v12 }
  0xfb   : > { %940 = vmatprep.subr.bf16.mxu1 %v1933_v1 }
  0xfd   : > { %1578 = vmatpush3.bf16.msra.mxu0 %v1704_v56 }
  0xfe   : > { %1579 = vmatprep.subr.bf16.mxu0 %v1932_v0  ;;  %941 = vmatpush1.bf16.msra.mxu1 %v1716_v32 }
  0xff   : > { %942 = vmatprep.subr.bf16.mxu1 %v1933_v1 }
 0x101   : > { %1580 = vmatpush3.bf16.msra.mxu0 %v1705_v57 }
 0x102   : > { %1581 = vmatprep.subr.bf16.mxu0 %v1932_v0  ;;  %943 = vmatpush1.bf16.msra.mxu1 %v1718_v40  ;;  %v1730_v40 = vld [vmem:[#allocation9 + $0xc8] sm:$0xff]  }
 0x103   : > { %944 = vmatprep.subr.bf16.mxu1 %v1933_v1 }
 0x105   : > { %1582 = vmatpush3.bf16.msra.mxu0 %v1706_v58  ;;  %v1724_v58 = vld [vmem:[#allocation9 + $0x48] sm:$0xff]  }
 0x106   : > { %1583 = vmatprep.subr.bf16.mxu0 %v1932_v0  ;;  %945 = vmatpush1.bf16.msra.mxu1 %v1720_v46  ;;  %v1734_v46 = vld [vmem:[#allocation10 + $0x8] sm:$0xff]  }
 0x107   : > { %946 = vmatprep.subr.bf16.mxu1 %v1933_v1 }
 0x109   : > { %1584 = vmatpush3.bf16.msra.mxu0 %v1707_v61 }
 0x10a   : > { %1032 = vmatprep.subr.bf16.mxu0 %v1933_v1  ;;  %947 = vmatpush1.bf16.msra.mxu1 %v1722_v51  ;;  %v1739_v51 = vld [vmem:[#allocation9 + $0xa0] sm:$0xff]  }
 0x10b   : > { %948 = vmatprep.subr.bf16.mxu1 %v1933_v1 }
 0x10c   : > { %1586 = vmatmul.mubr.msk.bf16.vlgmr.msra.gmra.mxu0 %vm2371_vm1, %v647_v2  ;;  %vm369_vm1 = vmor %vm368_vm15, %vm365_vm13  ;;  %vm388_vm13 = vcmask 122944  }
 0x10d   : > { %1033 = vmatpush1.bf16.msra.mxu0 %v1708_v3  ;;  %v371_v8 = vsel %vm369_vm1, 0, %v370_v7  ;;  %vm376_vm1 = vmor %vm375_vm3, %vm2214_vm5 }
 0x10e   : > { %1034 = vmatprep.subr.bf16.mxu0 %v1933_v1  ;;  %372 = vst [vmem:[#allocation3] sm:$0x11] %v371_v8  ;;  %v378_v13 = vsel %vm376_vm1, 0, %v377_v10  ;;  %949 = vmatpush1.bf16.msra.mxu1 %v1724_v58  ;;  %vm790_vm1 = vcmask 1040448  }
 0x10f   : > { %381 = vst.msk [vmem:[#allocation3] sm:$0xf] %vm380_vm10, %v1933_v1  ;;  %379 = vst [vmem:[#allocation3 + $0x10] sm:$0x11] %v378_v13  ;;  %964 = vmatprep.subr.bf16.mxu1 %v1933_v1  ;;  %vm780_vm10 = vcmask 64516  }
 0x110   : > { %386 = vst.msk [vmem:[#allocation3 + $0x4] sm:$0xf] %vm385_vm14, %v1933_v1  ;;  %vm779_vm14 = vmand %vm778_vm7, %vm349_vm2 }
 0x111   : > { %1035 = vmatpush1.bf16.msra.mxu0 %v1709_v5  ;;  %384 = vst.msk [vmem:[#allocation3 + $0x10] sm:$0x1] %vm383_vm6, %v1933_v1  ;;  %vm781_vm15 = vmand %vm780_vm10, %vm374_vm0  ;;  %vm792_vm6 = vcmask 61444  }
 0x112   : > { %1036 = vmatprep.subr.bf16.mxu0 %v1933_v1  ;;  %389 = vst.msk [vmem:[#allocation3 + $0x14] sm:$0x1] %vm388_vm13, %v1933_v1  ;;  %965 = vmatpush2.bf16.msra.mxu1 %v1726_v63  ;;  %vm782_vm13 = vmor %vm781_vm15, %vm779_vm14 }
 0x113   : > { %1162 = vmatprep.subr.bf16.mxu1 %v1933_v1  ;;  %vm788_vm0 = vmor %vm780_vm10, %vm778_vm7  ;;  %vm2400_vm7 = vcmask 588800  }
 0x115   : > { %1037 = vmatpush1.bf16.msra.mxu0 %v1711_v11 }
 0x116   : > { %1038 = vmatprep.subr.bf16.mxu0 %v1933_v1 }
 0x117   : > { %v783_v2 = vld [vmem:[#allocation3] sm:$0xff] }
 0x119   : > { %1039 = vmatpush1.bf16.msra.mxu0 %v1713_v14  ;;  %v795_v7 = vld [vmem:[#allocation3 + $0x10] sm:$0x11]  ;;  %v1725_v14 = vld [vmem:[#allocation10 + $0x20] ss:$0 sps:$4 sm:$0xff]  }
 0x11a   : > { %1040 = vmatprep.subr.bf16.mxu0 %v1933_v1 }
 0x11d   : > { %1041 = vmatpush1.bf16.msra.mxu0 %v1715_v15 }
 0x11e   : > { %1042 = vmatprep.subr.bf16.mxu0 %v1933_v1 }
 0x121   : > { %1043 = vmatpush1.bf16.msra.mxu0 %v1717_v34 }
 0x122   : > { %1044 = vmatprep.subr.bf16.mxu0 %v1933_v1 }
 0x125   : > { %1045 = vmatpush1.bf16.msra.mxu0 %v1719_v42  ;;  %v1732_v42 = vld [vmem:[#allocation10 + $0x10] sm:$0xff]  }
 0x126   : > { %1046 = vmatprep.subr.bf16.mxu0 %v1933_v1 }
 0x129   : > { %1047 = vmatpush1.bf16.msra.mxu0 %v1721_v47  ;;  %v1735_v47 = vld [vmem:[#allocation9 + $0xb8] sm:$0xff]  }
 0x12a   : > { %1062 = vmatprep.subr.bf16.mxu0 %v1933_v1 }
 0x12d   : > { %1063 = vmatpush2.bf16.msra.mxu0 %v1723_v54 }
 0x12e   : > { %1589 = vmatprep.subr.bf16.mxu0 %v1932_v0 }
 0x1b1   : > { %v623_v16 = vpop.f32.mrf.mxu1 }
 0x1b3   : > { %v1573_v17 = vpop.f32.mrf.mxu1 }
 0x1b5   : > { %v626_v18 = vpop.f32.mrf.mxu1 }
 0x1b7   : > { %v1574_v19 = vpop.f32.mrf.mxu1 }
 0x1b8   : > { %v550_v20 = vpop.f32.mrf.mxu0 }
 0x1b9   : > { %v624_v24 = vadd.f32 %v623_v16, %v550_v20 }
 0x1ba   : > { %v1559_v21 = vpop.f32.mrf.mxu0 }
 0x1bb   : > { %v1258_v21 = vsel %vm512_vm8, %v1725_v14, 0  ;;  %vm2397_vm8 = vsmask.f32 7424 }
 0x1bc   : > { %v553_v22 = vpop.f32.mrf.mxu0 }
 0x1bd   : > { %v627_v30 = vadd.f32 %v626_v18, %v553_v22 }
 0x1be   : > { %v1560_v23 = vpop.f32.mrf.mxu0 }
 0x1cc   : > { %v715_v25 = vpop.f32.mrf.mxu0 }
 0x1cd   : > { %v722_v27 = vadd.f32 %v715_v25, %v624_v24 }
 0x1ce   : > { %v1587_v29 = vpop.f32.mrf.mxu0 }
 0x1cf   : > { %v731_v31 = vadd.f32 %v1465_v26, %v722_v27  ;;  %v1727_v29 = vld [vmem:[#allocation10 + $0x18] sm:$0xff]  }
 0x1d0   : > { %v718_v33 = vpop.f32.mrf.mxu0 }
 0x1d1   : > { %vm733_vm3 = vcmp.gt.f32.partialorder %v731_v31, 0.0  ;;  %v735_v35 = vmul.f32 0.2, %v731_v31  ;;  %v723_v36 = vadd.f32 %v718_v33, %v627_v30 }
 0x1d2   : > { %v1588_v37 = vpop.f32.mrf.mxu0 }
 0x1d3   : > { %v737_v38 = vsel %vm733_vm3, %v731_v31, %v735_v35  ;;  %v732_v39 = vadd.f32 %v1465_v26, %v723_v36  ;;  %vm791_vm3 = vmand %vm790_vm1, %vm344_vm4  ;;  %vm930_vm4 = vcmask 130048  }
 0x1d4   : > { %v1520_v41 = vpack.c.bf16 %v737_v38, %v737_v38 }
 0x1d5   : > { %vm734_vm5 = vcmp.gt.f32.partialorder %v732_v39, 0.0  ;;  %v736_v43 = vmul.f32 0.2, %v732_v39 }
 0x1d6   : > { %v746_v44 = vshrl.u32 %v1520_v41, 16  ;;  %v749_v50 = vshll.u32 %v1520_v41, 16 }
 0x1d7   : > { %v738_v45 = vsel %vm734_vm5, %v732_v39, %v736_v43  ;;  %vm793_vm5 = vmand %vm792_vm6, %vm367_vm11 }
 0x1d8   : > { %v1521_v48 = vpack.c.bf16 %v738_v45, %v738_v45  ;;  %v748_v49 = vrot.slane %v746_v44, 7  ;;  %vm794_vm2 = vmor %vm793_vm5, %vm791_vm3  ;;  %v1733_v45 = vld [vmem:[#allocation9 + $0xc0] sm:$0xff]  }
 0x1d9   : > { %vm2398_vm11 = vmmov %vm2397_vm8 }
 0x1da   : > { %v751_v52 = vor.u32 %v749_v50, %v748_v49  ;;  %v754_v53 = vshrl.u32 %v1521_v48, 16  ;;  %v757_v57 = vshll.u32 %v1521_v48, 16  ;;  %v752_v60 = vrot.slane %v748_v49, 4  ;;  %v1736_v48 = vld [vmem:[#allocation10] sm:$0xff]   ;;  %v1737_v49 = vld [vmem:[#allocation9 + $0xb0] sm:$0xff]   ;;  %v1738_v50 = vld [vmem:[#allocation9 + $0xa8] sm:$0xff]  }
 0x1dc   : > { %762 = vrot.lane.b32.xlu1 %v751_v52, %s1936_s10  ;;  %v756_v56 = vrot.slane %v754_v53, 7  ;;  %v1740_v52 = vld [vmem:[#allocation9 + $0x98] sm:$0xff]  }
 0x1de   : > { %v761_v59 = vrot.slane %v756_v56, 4  ;;  %v759_v61 = vor.u32 %v757_v57, %v756_v56 }
 0x1e0   : > { %766 = vrot.lane.b32.xlu1 %v761_v59, %s1936_s10  ;;  %v760_v62 = vsel %vm2165_vm12, %v752_v60, %v759_v61  ;;  %vm771_vm12 = vcmask 64512  }
 0x1e1   : > { %764 = vrot.lane.b32.xlu0 %v760_v62, %s1936_s10 }
 0x24e   : > { %v763_v28 = vpop.permute.xlu1 %762 }
 0x24f   : > { %v768_v3 = vrot.slane %v763_v28, 4 }
 0x251   : > { %v772_v4 = vsel %vm771_vm12, %v768_v3, %v763_v28 }
 0x252   : > { %v784_v5 = vsel %vm782_vm13, %v772_v4, %v783_v2  ;;  %v767_v6 = vpop.permute.xlu1 %766 }
 0x253   : > { %785 = vst [vmem:[#allocation3] sm:$0xff] %v784_v5  ;;  %v770_v8 = vrot.slane %v767_v6, 4  ;;  %v765_v9 = vpop.permute.xlu0 %764 }
 0x254   : > { %v769_v10 = vrot.slane %v765_v9, 4 }
 0x255   : > { %v774_v11 = vsel %vm771_vm12, %v770_v8, %v767_v6 }
 0x256   : > { %v796_v12 = vsel %vm794_vm2, %v774_v11, %v795_v7  ;;  %v773_v13 = vsel %vm771_vm12, %v769_v10, %v765_v9  ;;  %v1505_v7 = vld [vmem:[%s2365_s6] ss:$0 sm:$0xff] }
 0x257   : > { %797 = vst [vmem:[#allocation3 + $0x10] sm:$0x11] %v796_v12  ;;  %789 = vst.msk [vmem:[#allocation3 + $0x8] sm:$0xff] %vm788_vm0, %v773_v13  ;;  %v1504_v9 = vld [vmem:[%s2363_s4] ss:$0 sm:$0xff] }
 0x25a   : > { %v2270_v22 = vld [vmem:[#allocation3] sm:$0xee] }
 0x25e   : > { %v2263_v15 = vld [vmem:[#allocation3 + $0x8] sm:$0xff]  ;;  %v818_v16 = vld [vmem:[#allocation3 + $0x10] sm:$0x11] }
 0x25f   : > { %v1469_v17 = vcombine.high %v784_v5, %v2263_v15  ;;  %v1468_v18 = vcombine.low %v784_v5, %v2263_v15  ;;  %v1471_v19 = vcombine.high %v818_v16, %v818_v16  ;;  %v2267_v20 = vcombine.low %v818_v16, %v818_v16 }
 0x260   : > { %v1493_v25 = vcombine.high %v2270_v22, %v2263_v15  ;;  %v1492_v53 = vcombine.low %v2270_v22, %v2263_v15 }
 0x261   : > { %1491 = vmatprep.mubr.msk.bf16.mxu0 %vm930_vm4, %v1469_v17  ;;  %v866_v23 = vshll.u32 %v1469_v17, 16  ;;  %v871_v24 = vshll.u32 %v1471_v19, 16  ;;  %v854_v26 = vshll.u32 %v1468_v18, 16  ;;  %v859_v27 = vshll.u32 %v2267_v20, 16 }
 0x262   : > { %1065 = vmatmul.mubr.bf16.vlgmr.msra.gmra.mxu0 %v1468_v18  ;;  %v864_v30 = vshrl.u32 %v1469_v17, 16  ;;  %v852_v32 = vshrl.u32 %v1468_v18, 16  ;;  %v1101_v36 = vrot.slane %v1493_v25, 1  ;;  %v1102_v37 = vrot.slane %v1471_v19, 1 }
 0x263   : > { %1590 = vmatpush3.bf16.msra.mxu0 %v1258_v21  ;;  %v868_v31 = vrot.slane %v866_v23, 1  ;;  %1599 = vmatprep.mubr.msk.bf16.mxu0 %vm1934_vm9, %v1932_v0  ;;  %v856_v33 = vrot.slane %v854_v26, 1  ;;  %v873_v35 = vrot.slane %v871_v24, 1  ;;  %v861_v39 = vrot.slane %v859_v27, 1 }
 0x264   : > { %1591 = vmatprep.subr.bf16.mxu0 %v1932_v0  ;;  %vm2399_vm9 = vcmask 1046528   ;;  %v1098_v54 = vrot.slane %v1492_v53, 1  ;;  %v1099_v56 = vrot.slane %v2267_v20, 1 }
 0x265   : > { %v869_v34 = vor.u32 %v868_v31, %v864_v30  ;;  %v857_v38 = vor.u32 %v856_v33, %v852_v32  ;;  %v1103_v44 = vsel %vm2399_vm9, %v1101_v36, %v1102_v37  ;;  %vm2401_vm10 = vmmov %vm2399_vm9 }
 0x266   : > { %v1100_v57 = vsel %vm2401_vm10, %v1098_v54, %v1099_v56 }
 0x267   : > { %1592 = vmatpush3.bf16.msra.mxu0 %v1727_v29  ;;  %v874_v41 = vsel %vm2397_vm8, %v869_v34, %v873_v35  ;;  %v862_v43 = vsel %vm2398_vm11, %v857_v38, %v861_v39 }
 0x268   : > { %1481 = vmatprep.mubr.msk.bf16.mxu1 %vm930_vm4, %v874_v41  ;;  %1593 = vmatprep.subr.bf16.mxu0 %v1932_v0 }
 0x269   : > { %967 = vmatmul.mubr.bf16.vlgmr.msra.gmra.mxu1 %v862_v43 }
 0x26a   : > { %1163 = vmatpush1.bf16.msra.mxu1 %v1730_v40  ;;  %1503 = vmatprep.mubr.msk.bf16.mxu1 %vm930_vm4, %v1103_v44 }
 0x26b   : > { %1594 = vmatpush3.bf16.msra.mxu0 %v1732_v42  ;;  %1164 = vmatprep.subr.bf16.mxu1 %v1933_v1 }
 0x26c   : > { %1595 = vmatprep.subr.bf16.mxu0 %v1932_v0 }
 0x26e   : > { %1165 = vmatpush1.bf16.msra.mxu1 %v1733_v45 }
 0x26f   : > { %1596 = vmatpush3.bf16.msra.mxu0 %v1734_v46  ;;  %1166 = vmatprep.subr.bf16.mxu1 %v1933_v1 }
 0x270   : > { %1597 = vmatprep.subr.bf16.mxu0 %v1932_v0  ;;  %v1741_v0 = vld [vmem:[#allocation9 + $0x90] sm:$0xff]  }
 0x272   : > { %1167 = vmatpush1.bf16.msra.mxu1 %v1735_v47 }
 0x273   : > { %1598 = vmatpush3.bf16.msra.mxu0 %v1736_v48  ;;  %1168 = vmatprep.subr.bf16.mxu1 %v1933_v1 }
 0x276   : > { %1169 = vmatpush1.bf16.msra.mxu1 %v1737_v49  ;;  %1600 = vmatmul.mubr.msk.bf16.vlgmr.msra.gmra.mxu0 %vm2400_vm7, %v2189_v55  ;;  %v1742_v55 = vld [vmem:[#allocation9 + $0xd0] sm:$0xff]  }
 0x277   : > { %1170 = vmatprep.subr.bf16.mxu1 %v1933_v1 }
 0x27a   : > { %1171 = vmatpush1.bf16.msra.mxu1 %v1738_v50 }
 0x27b   : > { %1172 = vmatprep.subr.bf16.mxu1 %v1933_v1 }
 0x27e   : > { %1173 = vmatpush1.bf16.msra.mxu1 %v1739_v51 }
 0x27f   : > { %1174 = vmatprep.subr.bf16.mxu1 %v1933_v1 }
 0x282   : > { %1175 = vmatpush1.bf16.msra.mxu1 %v1740_v52 }
 0x283   : > { %1176 = vmatprep.subr.bf16.mxu1 %v1933_v1 }
 0x286   : > { %1177 = vmatpush1.bf16.msra.mxu1 %v1741_v0 }
 0x287   : > { %1192 = vmatprep.subr.bf16.mxu1 %v1933_v1 }
 0x28a   : > { %1193 = vmatpush2.bf16.msra.mxu1 %v1742_v55 }
 0x28d   : > { %1195 = vmatmul.mubr.bf16.vlgmr.msra.gmra.mxu1 %v1100_v57 }
 0x322   : > { %v1066_v58 = vpop.f32.mrf.mxu0 }
 0x324   : > { %v1068_v59 = vpop.f32.mrf.mxu0 }
 0x326   : > { %v1069_v60 = vpop.f32.mrf.mxu0 }
 0x328   : > { %v1071_v61 = vpop.f32.mrf.mxu0 }
 0x329   : > { %v968_v62 = vpop.f32.mrf.mxu1 }
 0x32a   : > { %v1067_v1 = vadd.f32 %v1066_v58, %v968_v62 }
 0x32b   : > { %v970_v63 = vpop.f32.mrf.mxu1 }
 0x32d   : > { %v971_v28 = vpop.f32.mrf.mxu1 }
 0x32e   : > { %v1070_v12 = vadd.f32 %v1069_v60, %v971_v28 }
 0x32f   : > { %v973_v2 = vpop.f32.mrf.mxu1 }
 0x336   : > { %v1294_v3 = vpop.f32.mrf.mxu0 }
 0x337   : > { %v1295_v13 = vadd.f32 %v1505_v7, %v1294_v3 }
 0x338   : > { %v1601_v4 = vpop.f32.mrf.mxu0 }
 0x33a   : > { %v1297_v5 = vpop.f32.mrf.mxu0 }
 0x33b   : > { %v1298_v19 = vadd.f32 %v1505_v7, %v1297_v5 }
 0x33c   : > { %v1602_v6 = vpop.f32.mrf.mxu0 }
 0x34d   : > { %v1196_v8 = vpop.f32.mrf.mxu1 }
 0x34e   : > { %v1203_v10 = vadd.f32 %v1196_v8, %v1067_v1 }
 0x34f   : > { %v1198_v11 = vpop.f32.mrf.mxu1 }
 0x350   : > { %v1212_v14 = vadd.f32 %v1504_v9, %v1203_v10 }
 0x351   : > { %v1199_v15 = vpop.f32.mrf.mxu1 }
 0x352   : > { %v1301_v16 = vadd.f32 %v1295_v13, %v1212_v14  ;;  %v1204_v17 = vadd.f32 %v1199_v15, %v1070_v12 }
 0x353   : > { %v1201_v18 = vpop.f32.mrf.mxu1 }
 0x354   : > { %vm1303_vm14 = vcmp.gt.f32.partialorder %v1301_v16, 0.0  ;;  %v1305_v20 = vmul.f32 0.2, %v1301_v16  ;;  %v1213_v21 = vadd.f32 %v1504_v9, %v1204_v17 }
 0x356   : > { %v1307_v22 = vsel %vm1303_vm14, %v1301_v16, %v1305_v20  ;;  %v1302_v23 = vadd.f32 %v1298_v19, %v1213_v21 }
 0x357   : > { %1309 = vst [vmem:[%s340_s15] sm:$0xff] %v1307_v22 }
 0x358   : > { %vm1304_vm15 = vcmp.gt.f32.partialorder %v1302_v23, 0.0  ;;  %v1306_v24 = vmul.f32 0.2, %v1302_v23 }
 0x35a   : > { %v1308_v25 = vsel %vm1304_vm15, %v1302_v23, %v1306_v24 }
 0x35b   : > { %1310 = vst [vmem:[%s340_s15 + $0x8] sm:$0xff] %v1308_v25 }
 0x35c   : > { %1863 = shalt.err (!%p1860_p9)
}
 0x35d   : > { %s1864_s13 = scalar_lea.hbm %s2313_s30, 256  ;;  %s1868_s12 = scalar_lea.hbm %s2366_s7, 512 }
 0x35e   : > { %p1865_p1 = scmp.ne.s32.totalorder %s2313_s30, %s1864_s13  ;;  %p1869_p11 = scmp.lt.s32.totalorder %s2313_s30, %s2366_s7 }
 0x35f   : > { %p1870_p13 = scmp.lt.s32.totalorder %s1868_s12, %s1864_s13 }
 0x360   : > { %p1866_p8 = pnand %p1865_p1, %p2402_p6 }
 0x361   : > { %p1871_p2 = por %p1870_p13, %p1869_p11 }
 0x362   : > { %p1867_p10 = pneg %p1866_p8 }
 0x364   : > { %p1872_p4 = pnand %p1871_p2, %p1867_p10 }
 0x366   : > { %1875 = shalt.err (!%p1872_p4)
}
 0x367   : > { %s1938_s19 = smov 128  }
 0x368   : > { %1617 = dma.vmem_to_hbm [thread:$0]  (%p2402_p6), %s2315_s22, 256, %s2313_s30, %s1312_s28, %s1938_s19, %s1938_s19, %s1936_s10  }
 0x369 PF: > { %s1340_s9 = sand.u32 1, %s1910_s24   ;;  %p2403_p12 = scmp.ne.s32.totalorder %s2376_s8, 0 }
 0x36a   : > { %p2404_p0 = scmp.ge.s32.totalorder %s1922_s27, 2  ;;  %s1341_s1 = scalar_lea.sflag [#allocation6], %s1340_s9 }
 0x36c   : > { %p1634_p5 = pnand %p2404_p0, %p2403_p12 }
 0x36e   : > { %p1635_p3 = pneg %p1634_p5 }
 0x370   : > { %1905 = dma.done.wait (%p1635_p3), %s1341_s1, 256  }
 0x371   : > { %1907 = vsyncadd (%p1635_p3), %s1341_s1, 4294967040  ;;  %p22_p7 = scmp.ge.s32.totalorder %s2059_s14, 4   ;;  %s2405_s24 = smov %s1914_s25 }
 0x372   : > { %s2406_s25 = smov %s1918_s26  ;;  %s2407_s26 = smov %s2069_s17 }
 0x373   : > { %s2408_s27 = smov %s2059_s14  ;;  %24 = sbr.rel (!%p22_p7) target bundleno = 9 (0x9), region = 109 }
 0x378   :  { %1346 = vsyncpa [#allocation5], 1 }
 0x379   :  { %1348 = vsyncpa [#allocation5 + $0x1], 1 }
 0x37a   :  { %1349 = vsyncpa [#allocation8], 1 }
 0x37b   :  { %1350 = vsyncpa [#allocation11], 1 }
 0x37c   :  { %1351 = vsyncpa [#allocation6], 1 }
 0x37d   :  { %1353 = vsyncpa [#allocation6 + $0x1], 1 }

</bundles_post_ra>
